<compile_context>
chip_gen: v6e
topology: v6e:2x2x1
jax: 0.10.0
libtpu: 0.0.40
codegen_flags: <defaults>
</compile_context>

<pallas_src>
import functools

import jax
import jax.numpy as jnp
from jax.experimental import pallas as pl

LANES = 128          # lane width; hidden_size == LANES so the hidden axis is lane-dense
NEG_BIG = -1e30      # bias for padded classes -> exp underflows to exactly 0


def simple_nn_kernel(x_ref, p_ref, o_ref, *, in_f, hidden):
    # Packed parameter slab layout (rows):
    #   [0            : hidden          ]  w2 padded to [hidden, 128]
    #   [hidden       : hidden+in_f     ]  w1            [in_f,  128]
    #   [hidden+in_f  : hidden+in_f+1   ]  b1            [1,     128]
    #   [hidden+in_f+1: hidden+in_f+2   ]  b2 padded     [1,     128]
    x = x_ref[...]                                         # [B, in_f]

    # ---- fc1 on the VPU: unrolled K=in_f broadcast multiply-adds ----
    acc = x[:, 0:1] * p_ref[hidden:hidden + 1, :]          # [B,1]*[1,H] -> [B,H]
    for k in range(1, in_f):
        acc = acc + x[:, k:k + 1] * p_ref[hidden + k:hidden + k + 1, :]
    b1 = p_ref[hidden + in_f:hidden + in_f + 1, :]
    h = jnp.maximum(acc + b1, 0.0)                         # ReLU, [B, H]

    # ---- fc2 on the MXU: [B,H] @ [H,128] (lane-dense, class axis padded) ----
    w2 = p_ref[0:hidden, :]                                # sublane-aligned slice
    b2 = p_ref[hidden + in_f + 1:hidden + in_f + 2, :]
    logits = jnp.dot(h, w2, preferred_element_type=jnp.float32) + b2   # [B, 128]

    # ---- numerically stable log-softmax over the (padded) class axis ----
    # Padded classes have logit ~ NEG_BIG: never the max, exp underflows to 0.
    m = jnp.max(logits, axis=1, keepdims=True)             # XLU cross-lane reduce
    shifted = logits - m
    lse = jnp.log(jnp.sum(jnp.exp(shifted), axis=1, keepdims=True))    # EUP exp/log
    o_ref[...] = (shifted - lse).astype(o_ref.dtype)       # one lane-dense [B,128] store


def pack_params(w1, b1, w2, b2):
    """Pack (w1[in,H], b1[1,H], w2[H,O], b2[1,O]) into one [H+in+2, 128] f32 slab."""
    in_f, H = w1.shape
    O = w2.shape[1]
    assert H == LANES, "hidden_size must equal the 128-lane width for this packing"
    w2_pad = jnp.zeros((H, LANES), jnp.float32).at[:, :O].set(w2)
    b2_pad = jnp.full((1, LANES), NEG_BIG, jnp.float32).at[:, :O].set(b2)
    return jnp.concatenate(
        [w2_pad, w1.astype(jnp.float32), b1.reshape(1, H).astype(jnp.float32), b2_pad],
        axis=0,
    )  # [H + in_f + 2, 128]


@jax.jit
def simple_nn_forward(x, w1, b1, w2, b2):
    B, in_f = x.shape
    H = w1.shape[1]
    O = w2.shape[1]
    params = pack_params(w1, b1, w2, b2)                   # 1 slab -> 2 input DMAs total

    full = lambda shape: pl.BlockSpec(shape, lambda: tuple(0 for _ in shape))

    cost = pl.CostEstimate(
        flops=2 * B * in_f * H + 2 * B * H * LANES + 6 * B * LANES,
        transcendentals=B * LANES + B,                     # exp per lane + log per row
        bytes_accessed=(x.size + params.size + B * LANES) * 4,
    )

    out_padded = pl.pallas_call(
        functools.partial(simple_nn_kernel, in_f=in_f, hidden=H),
        out_shape=jax.ShapeDtypeStruct((B, LANES), jnp.float32),
        grid=(),                                           # tiny problem: no gridding
        in_specs=[
            full((B, in_f)),
            full(params.shape),
        ],
        out_specs=full((B, LANES)),
        cost_estimate=cost,
    )(x, params)
    return out_padded[:, :O]                               # slice padded classes away


def reference_forward(x, w1, b1, w2, b2):
    h = jnp.maximum(x @ w1 + b1, 0.0)
    logits = h @ w2 + b2
    return jax.nn.log_softmax(logits, axis=1)


if __name__ == "__main__":
    input_size = 3
    hidden_size = 128
    output_size = 3   # len(torch.unique(y)) in the original script; 3 classes chosen here
    batch = 8

    key = jax.random.PRNGKey(0)
    kx, k1, kb1, k2, kb2 = jax.random.split(key, 5)

    # Deterministic init mimicking nn.Linear's U(-1/sqrt(fan_in), 1/sqrt(fan_in)).
    # Weights stored as [in_features, out_features] (transposed from PyTorch's [out, in]).
    bound1 = 1.0 / (input_size ** 0.5)
    bound2 = 1.0 / (hidden_size ** 0.5)
    x = jax.random.normal(kx, (batch, input_size), dtype=jnp.float32)
    w1 = jax.random.uniform(k1, (input_size, hidden_size), jnp.float32, -bound1, bound1)
    b1 = jax.random.uniform(kb1, (1, hidden_size), jnp.float32, -bound1, bound1)
    w2 = jax.random.uniform(k2, (hidden_size, output_size), jnp.float32, -bound2, bound2)
    b2 = jax.random.uniform(kb2, (1, output_size), jnp.float32, -bound2, bound2)

    out = simple_nn_forward(x, w1, b1, w2, b2)
    jax.block_until_ready(out)

    ref = reference_forward(x, w1, b1, w2, b2)
    assert out.shape == (batch, output_size)
    assert jnp.allclose(out, ref, atol=1e-5, rtol=1e-5), (
        f"max abs err = {jnp.max(jnp.abs(out - ref))}")

    print("KERNEL_OK")
</pallas_src>

<mosaic_0001>
module attributes {stable_mosaic.version = 11 : i64} {
  func.func @simple_nn_kernel(%arg0: memref<8x3xf32, #tpu.memory_space<vmem>>, %arg1: memref<133x128xf32, #tpu.memory_space<vmem>>, %arg2: memref<8x128xf32, #tpu.memory_space<vmem>>) attributes {dimension_semantics = [], scalar_prefetch = 0 : i64, scratch_operands = 0 : i64, tpu.core_type = #tpu.core_type<tc>} {
    %c0 = arith.constant 0 : index
    %c0_0 = arith.constant 0 : index
    %0 = vector.load %arg0[%c0, %c0_0] : memref<8x3xf32, #tpu.memory_space<vmem>>, vector<8x3xf32>
    %1 = vector.extract_strided_slice %0 {offsets = [0, 0], sizes = [8, 1], strides = [1, 1]} : vector<8x3xf32> to vector<8x1xf32>
    %c128 = arith.constant 128 : index
    %c0_1 = arith.constant 0 : index
    %2 = vector.load %arg1[%c128, %c0_1] : memref<133x128xf32, #tpu.memory_space<vmem>>, vector<1x128xf32>
    %3 = vector.broadcast %1 : vector<8x1xf32> to vector<8x128xf32>
    %4 = vector.broadcast %2 : vector<1x128xf32> to vector<8x128xf32>
    %5 = arith.mulf %3, %4 : vector<8x128xf32>
    %6 = vector.extract_strided_slice %0 {offsets = [0, 1], sizes = [8, 1], strides = [1, 1]} : vector<8x3xf32> to vector<8x1xf32>
    %c129 = arith.constant 129 : index
    %c0_2 = arith.constant 0 : index
    %7 = vector.load %arg1[%c129, %c0_2] : memref<133x128xf32, #tpu.memory_space<vmem>>, vector<1x128xf32>
    %8 = vector.broadcast %6 : vector<8x1xf32> to vector<8x128xf32>
    %9 = vector.broadcast %7 : vector<1x128xf32> to vector<8x128xf32>
    %10 = arith.mulf %8, %9 : vector<8x128xf32>
    %11 = arith.addf %5, %10 : vector<8x128xf32>
    %12 = vector.extract_strided_slice %0 {offsets = [0, 2], sizes = [8, 1], strides = [1, 1]} : vector<8x3xf32> to vector<8x1xf32>
    %c130 = arith.constant 130 : index
    %c0_3 = arith.constant 0 : index
    %13 = vector.load %arg1[%c130, %c0_3] : memref<133x128xf32, #tpu.memory_space<vmem>>, vector<1x128xf32>
    %14 = vector.broadcast %12 : vector<8x1xf32> to vector<8x128xf32>
    %15 = vector.broadcast %13 : vector<1x128xf32> to vector<8x128xf32>
    %16 = arith.mulf %14, %15 : vector<8x128xf32>
    %17 = arith.addf %11, %16 : vector<8x128xf32>
    %c131 = arith.constant 131 : index
    %c0_4 = arith.constant 0 : index
    %18 = vector.load %arg1[%c131, %c0_4] : memref<133x128xf32, #tpu.memory_space<vmem>>, vector<1x128xf32>
    %19 = vector.broadcast %18 : vector<1x128xf32> to vector<8x128xf32>
    %20 = arith.addf %17, %19 : vector<8x128xf32>
    %cst = arith.constant 0.000000e+00 : f32
    %21 = vector.broadcast %cst : f32 to vector<8x128xf32>
    %22 = arith.maximumf %20, %21 : vector<8x128xf32>
    %c0_5 = arith.constant 0 : index
    %c0_6 = arith.constant 0 : index
    %23 = vector.load %arg1[%c0_5, %c0_6] : memref<133x128xf32, #tpu.memory_space<vmem>>, vector<128x128xf32>
    %c132 = arith.constant 132 : index
    %c0_7 = arith.constant 0 : index
    %24 = vector.load %arg1[%c132, %c0_7] : memref<133x128xf32, #tpu.memory_space<vmem>>, vector<1x128xf32>
    %cst_8 = arith.constant dense<0.000000e+00> : vector<8x128xf32>
    %25 = tpu.matmul %22, %23, %cst_8 {dimension_numbers = #tpu.dot_dimension_numbers<[1], [0], [0], [1], [0, 0, 1, 1], [], []>} : vector<8x128xf32>, vector<128x128xf32>, vector<8x128xf32> -> vector<8x128xf32>
    %26 = vector.broadcast %24 : vector<1x128xf32> to vector<8x128xf32>
    %27 = arith.addf %25, %26 : vector<8x128xf32>
    %cst_9 = arith.constant dense<0xFF800000> : vector<8xf32>
    %28 = vector.multi_reduction <maximumf>, %27, %cst_9 [1] : vector<8x128xf32> to vector<8xf32>
    %29 = vector.shape_cast %28 : vector<8xf32> to vector<8x1xf32>
    %30 = vector.broadcast %29 : vector<8x1xf32> to vector<8x128xf32>
    %31 = arith.subf %27, %30 : vector<8x128xf32>
    %32 = math.exp %31 : vector<8x128xf32>
    %cst_10 = arith.constant dense<0.000000e+00> : vector<8xf32>
    %33 = vector.multi_reduction <add>, %32, %cst_10 [1] : vector<8x128xf32> to vector<8xf32>
    %34 = vector.shape_cast %33 : vector<8xf32> to vector<8x1xf32>
    %35 = math.log %34 : vector<8x1xf32>
    %36 = vector.broadcast %35 : vector<8x1xf32> to vector<8x128xf32>
    %37 = arith.subf %31, %36 : vector<8x128xf32>
    %c0_11 = arith.constant 0 : index
    %c0_12 = arith.constant 0 : index
    %38 = vector.load %arg2[%c0_11, %c0_12] : memref<8x128xf32, #tpu.memory_space<vmem>>, vector<8x128xf32>
    tpu.vector_store %arg2[%c0_11, %c0_12], %37 {strides = array<i32>} : memref<8x128xf32, #tpu.memory_space<vmem>>, vector<8x128xf32>,
    return
  }
}

</mosaic_0001>

<bundles_post_ra>
// kernel: simple_nn_forward.1
= control target key start
LH: loop header
LB: loop body
LE: loop exit
PB: predicated region body
PF: predicated region fallthrough
CT: control target
= control target key end

     0   :  { %v228_v0 = vmov 0   ;;  %v229_v2 = vmov 2   ;;  %v230_v4 = vmov 0.0   ;;  %v231_v7 = vmov 1   ;;  %s317_s0 = inlined_call_operand.vmem [shape: f32[8,3], index: 0, kind: input, shape index: {}]   ;;  %s318_s1 = inlined_call_operand.vmem [shape: f32[133,128], index: 1, kind: input, shape index: {}]   ;;  %s319_s2 = inlined_call_operand.vmem [shape: f32[8,128], index: 2, kind: output, shape index: {}]  }
   0x1   :  { %220 = vset.pattern.permute.xlu0 %v228_v0  ;;  %v11_v1 = vld [vmem:[%s317_s0] sm:$0xff]  ;;  %222 = vset.pattern.permute.xlu1 %v229_v2  ;;  %v67_v3 = vld [vmem:[%s318_s1 + $0x78] sm:$0xff]  ;;  %v66_v5 = vld [vmem:[%s318_s1 + $0x70] sm:$0xff]  ;;  %vm232_vm0 = vmmov 0  }
   0x2   :  { %15 = vperm.xlu0 %220, %v11_v1   ;;  %36 = vperm.xlu1 %222, %v11_v1   ;;  %v65_v6 = vld [vmem:[%s318_s1 + $0x68] sm:$0xff]  ;;  %v64_v8 = vld [vmem:[%s318_s1 + $0x60] sm:$0xff]  ;;  %v63_v9 = vld [vmem:[%s318_s1 + $0x58] sm:$0xff] }
   0x3   :  { %180 = vmatprep.subr.mxu0 %v230_v4  ;;  %212 = vmatprep.mubr.msk.f32.mxu0 %vm232_vm0, %v230_v4  ;;  %v62_v10 = vld [vmem:[%s318_s1 + $0x50] sm:$0xff]  ;;  %v61_v11 = vld [vmem:[%s318_s1 + $0x48] sm:$0xff]  ;;  %v60_v12 = vld [vmem:[%s318_s1 + $0x40] sm:$0xff] }
   0x4   :  { %181 = vmatpush3.msra.mxu0 %v67_v3  ;;  %v59_v13 = vld [vmem:[%s318_s1 + $0x38] sm:$0xff]  ;;  %v58_v14 = vld [vmem:[%s318_s1 + $0x30] sm:$0xff]  ;;  %v57_v15 = vld [vmem:[%s318_s1 + $0x28] sm:$0xff] }
   0x5   :  { %182 = vmatprep.subr.mxu0 %v230_v4  ;;  %v56_v16 = vld [vmem:[%s318_s1 + $0x20] sm:$0xff]  ;;  %v55_v17 = vld [vmem:[%s318_s1 + $0x18] sm:$0xff]  ;;  %v54_v18 = vld [vmem:[%s318_s1 + $0x10] sm:$0xff] }
   0x6   :  { %221 = vset.pattern.permute.xlu0 %v231_v7  ;;  %183 = vmatpush3.msra.mxu0 %v66_v5  ;;  %v53_v19 = vld [vmem:[%s318_s1 + $0x8] sm:$0xff]  ;;  %v52_v20 = vld [vmem:[%s318_s1] sm:$0xff] }
   0x7   :  { %25 = vperm.xlu0 %221, %v11_v1   ;;  %184 = vmatprep.subr.mxu0 %v230_v4  ;;  %v158_v22 = vld [vmem:[%s318_s1 + $0x80] ss:$0 sm:$0xff]  ;;  %v159_v23 = vld [vmem:[%s318_s1 + $0x81] ss:$0 sm:$0xff]  ;;  %v160_v24 = vld [vmem:[%s318_s1 + $0x82] ss:$0 sm:$0xff] }
   0x8   :  { %185 = vmatpush3.msra.mxu0 %v65_v6  ;;  %v161_v31 = vld [vmem:[%s318_s1 + $0x83] ss:$0 sm:$0xff]  ;;  %v162_v35 = vld [vmem:[%s318_s1 + $0x84] ss:$0 sm:$0xff] }
   0x9   :  { %186 = vmatprep.subr.mxu0 %v230_v4 }
   0xa   :  { %187 = vmatpush3.msra.mxu0 %v64_v8 }
   0xb   :  { %188 = vmatprep.subr.mxu0 %v230_v4  ;;  %223 = vset.pattern.permute.xlu0 %v229_v2 }
   0xc   :  { %189 = vmatpush3.msra.mxu0 %v63_v9 }
   0xd   :  { %190 = vmatprep.subr.mxu0 %v230_v4 }
   0xe   :  { %191 = vmatpush3.msra.mxu0 %v62_v10 }
   0xf   :  { %192 = vmatprep.subr.mxu0 %v230_v4 }
  0x10   :  { %193 = vmatpush3.msra.mxu0 %v61_v11 }
  0x11   :  { %194 = vmatprep.subr.mxu0 %v230_v4 }
  0x12   :  { %195 = vmatpush3.msra.mxu0 %v60_v12 }
  0x13   :  { %196 = vmatprep.subr.mxu0 %v230_v4 }
  0x14   :  { %197 = vmatpush3.msra.mxu0 %v59_v13 }
  0x15   :  { %198 = vmatprep.subr.mxu0 %v230_v4 }
  0x16   :  { %199 = vmatpush3.msra.mxu0 %v58_v14 }
  0x17   :  { %200 = vmatprep.subr.mxu0 %v230_v4 }
  0x18   :  { %201 = vmatpush3.msra.mxu0 %v57_v15 }
  0x19   :  { %202 = vmatprep.subr.mxu0 %v230_v4 }
  0x1a   :  { %203 = vmatpush3.msra.mxu0 %v56_v16 }
  0x1b   :  { %204 = vmatprep.subr.mxu0 %v230_v4 }
  0x1c   :  { %205 = vmatpush3.msra.mxu0 %v55_v17 }
  0x1d   :  { %206 = vmatprep.subr.mxu0 %v230_v4 }
  0x1e   :  { %207 = vmatpush3.msra.mxu0 %v54_v18 }
  0x1f   :  { %208 = vmatprep.subr.mxu0 %v230_v4 }
  0x20   :  { %209 = vmatpush3.msra.mxu0 %v53_v19 }
  0x21   :  { %210 = vmatprep.subr.mxu0 %v230_v4 }
  0x22   :  { %211 = vmatpush3.msra.mxu0 %v52_v20 }
  0x7d   :  { %v16_v21 = vpop.permute.xlu0 %15  ;;  %v37_v25 = vpop.permute.xlu1 %36 }
  0x7e   :  { %v22_v27 = vmul.f32 %v158_v22, %v16_v21  ;;  %v43_v29 = vmul.f32 %v160_v24, %v37_v25 }
  0x82   :  { %v26_v26 = vpop.permute.xlu0 %25 }
  0x83   :  { %v32_v28 = vmul.f32 %v159_v23, %v26_v26 }
  0x85   :  { %v33_v30 = vadd.f32 %v32_v28, %v22_v27 }
  0x87   :  { %v44_v32 = vadd.f32 %v43_v29, %v33_v30 }
  0x89   :  { %v50_v33 = vadd.f32 %v161_v31, %v44_v32 }
  0x8b   :  { %v51_v34 = vmax.f32 %v50_v33, 0.0 }
  0x8d   :  { %213 = vmatmul.mubr.f32.vlgmr.msra.gmra.mxu0 %v51_v34 }
 0x14d   :  { %v139_v36 = vpop.f32.mrf.mxu0 }
 0x14e   :  { %v140_v37 = vadd.f32 %v162_v35, %v139_v36 }
 0x14f   :  { %v214_v38 = vpop.f32.mrf.mxu0 }
 0x150   :  { %143 = vmax.xlane.f32.xlu1 %v140_v37 }
 0x1d9   :  { %v144_v39 = vpop.xlane.xlu1 %143 }
 0x1da   :  { %v145_v40 = vsub.f32 %v140_v37, %v144_v39 }
 0x1dc   :  { %v146_v41 = vmul.f32 1.442695, %v145_v40 }
 0x1de   :  { %224 = vpow2.f32 %v146_v41 }
 0x1eb   :  { %v225_v42 = vpop.eup %224 }
 0x1ec   :  { %148 = vadd.xlane.f32.xlu0 %v225_v42 }
 0x275   :  { %v149_v43 = vpop.xlane.xlu0 %148 }
 0x276   :  { %226 = vlog2.f32 %v149_v43 }
 0x283   :  { %v227_v44 = vpop.eup %226 }
 0x284   :  { %v151_v45 = vmul.f32 0.6931472, %v227_v44 }
 0x286   :  { %v152_v46 = vsub.f32 %v145_v40, %v151_v45 }
 0x288   :  { %153 = vst [vmem:[%s319_s2] sm:$0xff] %v152_v46 }

</bundles_post_ra>
